<compile_context>
chip_gen: v5e
topology: v5e:2x2
jax: 0.10.0
libtpu: 0.0.40
codegen_flags: <defaults>
</compile_context>

<pallas_src>
import functools

import jax
import jax.numpy as jnp
from jax.experimental import pallas as pl
from jax.experimental.pallas import tpu as pltpu


_LANE = 128
_SUBLANE = 8


# ---------------------------------------------------------------------------
# Generation-aware VMEM budgeting
# ---------------------------------------------------------------------------
def _vmem_capacity_bytes():
    try:
        info = pltpu.get_tpu_info()
        cap = getattr(info, "vmem_capacity_bytes", None)
        if cap:
            return int(cap)
    except Exception:
        pass
    return 64 << 20  # conservative: v7x per-TensorCore VMEM


def _vmem_limit_bytes():
    cap = _vmem_capacity_bytes()
    if cap <= (64 << 20):
        return 40 << 20          # v7x: leave headroom below 64 MiB/TC
    return 64 << 20              # v5e / v6e: 128 MiB physical


def _tile_vmem_budget():
    return _vmem_limit_bytes() - (8 << 20)   # headroom for Mosaic internal scratch


def _round_up(x, m):
    return (x + m - 1) // m * m


# ---------------------------------------------------------------------------
# Tile selection
# ---------------------------------------------------------------------------
def _pick_th(d_in_p, h_p, d_out_p, w_itemsize, budget):
    """Hidden-dim tile: largest multiple of 128 whose (double-buffered) fc1/fc2
    weight slices fit ~60% of the tile budget."""
    weight_budget = int(budget * 0.6)
    th = h_p
    while th > _LANE:
        if 2 * (d_in_p + d_out_p) * th * w_itemsize <= weight_budget:
            break
        th = max(_LANE, _round_up(th // 2, _LANE))
    return th


def _pick_tm(m, d_in_p, th, d_out_p, w_itemsize, x_itemsize, o_itemsize, budget):
    """Row tile: largest MXU-friendly tile (capped at 256 — fully feeds even the
    256-wide MXU and keeps f32 intermediates / spill stores small on v5e)."""
    w_bytes = 2 * (d_in_p + d_out_p) * th * w_itemsize + 2 * (th + d_out_p) * 4
    tm = _SUBLANE
    for cand in (256, 128, 64, 32, 16, 8):
        io_bytes = 2 * cand * (d_in_p * x_itemsize + d_out_p * o_itemsize)
        acc_bytes = cand * d_out_p * 4            # f32 accumulator scratch
        inter_bytes = 2 * cand * th * 4           # f32 fc1 activations + temps
        if w_bytes + io_bytes + acc_bytes + inter_bytes <= budget:
            tm = cand
            break
    # Don't over-pad tiny token counts.
    tm = min(tm, _round_up(max(m, 1), _SUBLANE))
    return max(tm, _SUBLANE)


def _pad_to(a, rows, cols):
    r, c = a.shape
    if r == rows and c == cols:
        return a
    return jnp.pad(a, ((0, rows - r), (0, cols - c)))


# ---------------------------------------------------------------------------
# Kernel
# ---------------------------------------------------------------------------
def _mlp_kernel(x_ref, w1_ref, b1_ref, w2_ref, b2_ref, o_ref, acc_ref,
                *, approximate_gelu):
    # Grid: (m_tiles, h_tiles).  The h axis is a reduction ("arbitrary").
    # x_ref:  (tm, D_in)    token tile (constant across h axis)
    # w1_ref: (D_in, th)    fc1 weight slice (transposed vs torch)
    # b1_ref: (1, th)       fc1 bias slice (f32)
    # w2_ref: (th, D_out)   fc2 weight slice
    # b2_ref: (1, D_out)    fc2 bias (f32)
    # o_ref:  (tm, D_out)   output tile
    # acc_ref:(tm, D_out)   f32 accumulator scratch
    k = pl.program_id(1)

    @pl.when(k == 0)
    def _():
        acc_ref[...] = jnp.zeros_like(acc_ref)

    # fc1 (+ bias), f32 accumulation on the MXU.
    h = jnp.dot(x_ref[...], w1_ref[...], preferred_element_type=jnp.float32)
    h = h + b1_ref[...]

    # GELU.  approximate=True -> tanh on the EUP slot (much cheaper than the
    # erf VPU polynomial); exact mode kept for bit-parity with torch default.
    h = jax.nn.gelu(h, approximate=approximate_gelu)

    # drop1 is identity at inference.

    # Partial fc2 contribution of this hidden-dim slice, f32 accumulation.
    acc_ref[...] += jnp.dot(h.astype(w2_ref.dtype), w2_ref[...],
                            preferred_element_type=jnp.float32)

    # drop2 is identity at inference.
    @pl.when(k == pl.num_programs(1) - 1)
    def _():
        o_ref[...] = (acc_ref[...] + b2_ref[...]).astype(o_ref.dtype)


# ---------------------------------------------------------------------------
# Parameter preparation (do this ONCE per model, not per forward call)
# ---------------------------------------------------------------------------
def prepare_quant_mlp_params(w1, b1, w2, b2, *, compute_dtype=jnp.bfloat16):
    """Pad feature dims to lane-dense multiples of 128 (and H to a multiple of
    the hidden tile) and cast weights to the MXU compute dtype.  Biases stay
    f32.  Zero padding is exact for the MLP math (GELU(0)=0, zero rows/cols
    contribute nothing)."""
    d_in, h = w1.shape
    h2, d_out = w2.shape
    assert h2 == h, "fc1 output dim must equal fc2 input dim"

    w_dtype = jnp.dtype(compute_dtype) if compute_dtype is not None else jnp.dtype(w1.dtype)
    w_itemsize = w_dtype.itemsize

    d_in_p = _round_up(d_in, _LANE)
    d_out_p = _round_up(d_out, _LANE)
    h_p = _round_up(h, _LANE)

    budget = _tile_vmem_budget()
    th = _pick_th(d_in_p, h_p, d_out_p, w_itemsize, budget)
    h_p = _round_up(h_p, th)

    w1_p = _pad_to(w1.astype(w_dtype), d_in_p, h_p)
    b1_p = _pad_to(jnp.asarray(b1, jnp.float32).reshape(1, -1), 1, h_p)
    w2_p = _pad_to(w2.astype(w_dtype), h_p, d_out_p)
    b2_p = _pad_to(jnp.asarray(b2, jnp.float32).reshape(1, -1), 1, d_out_p)

    return dict(w1=w1_p, b1=b1_p, w2=w2_p, b2=b2_p,
                d_in=d_in, h=h, d_out=d_out, th=th)


# ---------------------------------------------------------------------------
# Forward
# ---------------------------------------------------------------------------
def quant_mlp_forward(x, params, *, tm=None, approximate_gelu=True,
                      interpret=False):
    """x: (B, N, D_in) -> (B, N, D_out) using prepared (padded/cast) params."""
    B, N, d_in = x.shape
    assert d_in == params["d_in"]
    d_out = params["d_out"]
    h = params["h"]
    th = params["th"]

    w1_p, b1_p, w2_p, b2_p = params["w1"], params["b1"], params["w2"], params["b2"]
    d_in_p, h_p = w1_p.shape
    d_out_p = w2_p.shape[1]

    M = B * N
    out_dtype = x.dtype
    compute_dtype = w1_p.dtype

    if tm is None:
        tm = _pick_tm(M, d_in_p, th, d_out_p,
                      jnp.dtype(compute_dtype).itemsize,
                      jnp.dtype(compute_dtype).itemsize,
                      jnp.dtype(out_dtype).itemsize,
                      _tile_vmem_budget())
    m_p = _round_up(M, tm)

    # Only x needs per-call padding (and casting to the compute dtype).
    x2 = _pad_to(x.reshape(M, d_in).astype(compute_dtype), m_p, d_in_p)

    grid = (m_p // tm, h_p // th)

    cost = pl.CostEstimate(
        flops=int(2 * M * (d_in * h + h * d_out)),
        transcendentals=int(M * h),
        bytes_accessed=int(
            x2.size * x2.dtype.itemsize
            + w1_p.size * w1_p.dtype.itemsize
            + w2_p.size * w2_p.dtype.itemsize
            + b1_p.size * 4 + b2_p.size * 4
            + m_p * d_out_p * jnp.dtype(out_dtype).itemsize),
    )

    kernel = functools.partial(_mlp_kernel, approximate_gelu=approximate_gelu)

    out = pl.pallas_call(
        kernel,
        out_shape=jax.ShapeDtypeStruct((m_p, d_out_p), out_dtype),
        grid_spec=pltpu.PrefetchScalarGridSpec(
            num_scalar_prefetch=0,
            grid=grid,
            in_specs=[
                pl.BlockSpec((tm, d_in_p), lambda i, k: (i, 0)),     # x tile (resident over k)
                pl.BlockSpec((d_in_p, th), lambda i, k: (0, k)),     # W1 hidden slice
                pl.BlockSpec((1, th), lambda i, k: (0, k)),          # b1 slice
                pl.BlockSpec((th, d_out_p), lambda i, k: (k, 0)),    # W2 hidden slice
                pl.BlockSpec((1, d_out_p), lambda i, k: (0, 0)),     # b2
            ],
            out_specs=pl.BlockSpec((tm, d_out_p), lambda i, k: (i, 0)),
            scratch_shapes=[pltpu.VMEM((tm, d_out_p), jnp.float32)],
        ),
        compiler_params=pltpu.CompilerParams(
            dimension_semantics=("parallel", "arbitrary"),
            vmem_limit_bytes=_vmem_limit_bytes(),
        ),
        cost_estimate=cost,
        interpret=interpret,
    )(x2, w1_p, b1_p, w2_p, b2_p)

    return out[:M, :d_out].reshape(B, N, d_out)


# ---------------------------------------------------------------------------
# Reference (mirrors the kernel's compute dtypes for a tight comparison)
# ---------------------------------------------------------------------------
def _reference(x, w1, b1, w2, b2, *, compute_dtype=jnp.bfloat16, approximate=True):
    xc = x.astype(compute_dtype)
    w1c = w1.astype(compute_dtype)
    w2c = w2.astype(compute_dtype)
    h = jnp.einsum("bnd,dh->bnh", xc, w1c,
                   preferred_element_type=jnp.float32) + b1.astype(jnp.float32)
    h = jax.nn.gelu(h, approximate=approximate)
    y = jnp.einsum("bnh,hd->bnd", h.astype(compute_dtype), w2c,
                   preferred_element_type=jnp.float32) + b2.astype(jnp.float32)
    return y.astype(x.dtype)


if __name__ == "__main__":
    # Small ViT-like shapes: batch=2, seq=8, embed=32, hidden=4*embed=128
    B, N, D, Hdim = 2, 8, 32, 128

    key = jax.random.PRNGKey(0)
    kx, kw1, kb1, kw2, kb2 = jax.random.split(key, 5)

    x = jax.random.normal(kx, (B, N, D), dtype=jnp.float32)
    # deterministic init (roughly Linear-default scale)
    w1 = jax.random.normal(kw1, (D, Hdim), dtype=jnp.float32) * (1.0 / D ** 0.5)
    b1 = jax.random.normal(kb1, (Hdim,), dtype=jnp.float32) * 0.01
    w2 = jax.random.normal(kw2, (Hdim, D), dtype=jnp.float32) * (1.0 / Hdim ** 0.5)
    b2 = jax.random.normal(kb2, (D,), dtype=jnp.float32) * 0.01

    # Weight padding / casting is hoisted out of the per-call path.
    params = prepare_quant_mlp_params(w1, b1, w2, b2, compute_dtype=jnp.bfloat16)

    out = quant_mlp_forward(x, params, approximate_gelu=True)
    out = jax.block_until_ready(out)

    ref = _reference(x, w1, b1, w2, b2, compute_dtype=jnp.bfloat16, approximate=True)
    assert out.shape == (B, N, D)
    err = float(jnp.max(jnp.abs(out - ref)))
    assert jnp.allclose(out, ref, atol=2e-3, rtol=2e-3), f"max abs err {err}"

    # Also sanity-check against the pure-f32 exact-GELU reference (loose tol:
    # bf16 compute + tanh-GELU approximation).
    ref_f32 = _reference(x, w1, b1, w2, b2, compute_dtype=jnp.float32, approximate=False)
    err_f32 = float(jnp.max(jnp.abs(out - ref_f32)))
    assert err_f32 < 5e-2, f"max abs err vs f32 exact ref {err_f32}"

    print("KERNEL_OK")
</pallas_src>

<mosaic_0001>
module attributes {stable_mosaic.version = 11 : i64} {
  func.func @_mlp_kernel(%arg0: i32, %arg1: i32, %arg2: memref<16x128xbf16, #tpu.memory_space<vmem>>, %arg3: memref<128x128xbf16, #tpu.memory_space<vmem>>, %arg4: memref<1x128xf32, #tpu.memory_space<vmem>>, %arg5: memref<128x128xbf16, #tpu.memory_space<vmem>>, %arg6: memref<1x128xf32, #tpu.memory_space<vmem>>, %arg7: memref<16x128xf32, #tpu.memory_space<vmem>>, %arg8: memref<16x128xf32, #tpu.memory_space<vmem>>) attributes {dimension_semantics = [#tpu.dimension_semantics<parallel>, #tpu.dimension_semantics<arbitrary>], iteration_bounds = array<i64: 1, 1>, scalar_prefetch = 0 : i64, scratch_operands = 1 : i64, tpu.core_type = #tpu.core_type<tc>, window_params = [{transform_indices = @transform_0, window_bounds = array<i64: 16, 128>}, {transform_indices = @transform_1, window_bounds = array<i64: 128, 128>}, {transform_indices = @transform_2, window_bounds = array<i64: 1, 128>}, {transform_indices = @transform_3, window_bounds = array<i64: 128, 128>}, {pipeline_mode = #tpu.pipeline_mode<synchronous>, transform_indices = @transform_4, window_bounds = array<i64: 1, 128>}, {transform_indices = @transform_5, window_bounds = array<i64: 16, 128>}]} {
    %c0_i32 = arith.constant 0 : i32
    %0 = arith.cmpi eq, %arg1, %c0_i32 : i32
    %1 = arith.extui %0 : i1 to i32
    %c0_i32_0 = arith.constant 0 : i32
    %2 = arith.cmpi ne, %1, %c0_i32_0 : i32
    scf.if %2 {
      %cst_19 = arith.constant 0.000000e+00 : f32
      %31 = vector.broadcast %cst_19 : f32 to vector<16x128xf32>
      %c0_20 = arith.constant 0 : index
      %c0_21 = arith.constant 0 : index
      %32 = vector.load %arg8[%c0_20, %c0_21] : memref<16x128xf32, #tpu.memory_space<vmem>>, vector<16x128xf32>
      tpu.vector_store %arg8[%c0_20, %c0_21], %31 {strides = array<i32>} : memref<16x128xf32, #tpu.memory_space<vmem>>, vector<16x128xf32>,
    } else {
    }
    %c0 = arith.constant 0 : index
    %c0_1 = arith.constant 0 : index
    %3 = vector.load %arg2[%c0, %c0_1] : memref<16x128xbf16, #tpu.memory_space<vmem>>, vector<16x128xbf16>
    %c0_2 = arith.constant 0 : index
    %c0_3 = arith.constant 0 : index
    %4 = vector.load %arg3[%c0_2, %c0_3] : memref<128x128xbf16, #tpu.memory_space<vmem>>, vector<128x128xbf16>
    %cst = arith.constant dense<0.000000e+00> : vector<16x128xf32>
    %5 = tpu.matmul %3, %4, %cst {dimension_numbers = #tpu.dot_dimension_numbers<[1], [0], [0], [1], [0, 0, 1, 1], [], []>} : vector<16x128xbf16>, vector<128x128xbf16>, vector<16x128xf32> -> vector<16x128xf32>
    %c0_4 = arith.constant 0 : index
    %c0_5 = arith.constant 0 : index
    %6 = vector.load %arg4[%c0_4, %c0_5] : memref<1x128xf32, #tpu.memory_space<vmem>>, vector<1x128xf32>
    %7 = vector.broadcast %6 : vector<1x128xf32> to vector<16x128xf32>
    %8 = arith.addf %5, %7 : vector<16x128xf32>
    %9 = arith.mulf %8, %8 : vector<16x128xf32>
    %10 = arith.mulf %8, %9 : vector<16x128xf32>
    %cst_6 = arith.constant 4.471500e-02 : f32
    %11 = vector.broadcast %cst_6 : f32 to vector<16x128xf32>
    %12 = arith.mulf %11, %10 : vector<16x128xf32>
    %13 = arith.addf %8, %12 : vector<16x128xf32>
    %cst_7 = arith.constant 0.797884583 : f32
    %14 = vector.broadcast %cst_7 : f32 to vector<16x128xf32>
    %15 = arith.mulf %14, %13 : vector<16x128xf32>
    %16 = math.tanh %15 : vector<16x128xf32>
    %cst_8 = arith.constant 1.000000e+00 : f32
    %17 = vector.broadcast %cst_8 : f32 to vector<16x128xf32>
    %18 = arith.addf %17, %16 : vector<16x128xf32>
    %cst_9 = arith.constant 5.000000e-01 : f32
    %19 = vector.broadcast %cst_9 : f32 to vector<16x128xf32>
    %20 = arith.mulf %19, %18 : vector<16x128xf32>
    %21 = arith.mulf %8, %20 : vector<16x128xf32>
    %c0_10 = arith.constant 0 : index
    %c0_11 = arith.constant 0 : index
    %22 = vector.load %arg8[%c0_10, %c0_11] : memref<16x128xf32, #tpu.memory_space<vmem>>, vector<16x128xf32>
    %23 = arith.truncf %21 : vector<16x128xf32> to vector<16x128xbf16>
    %c0_12 = arith.constant 0 : index
    %c0_13 = arith.constant 0 : index
    %24 = vector.load %arg5[%c0_12, %c0_13] : memref<128x128xbf16, #tpu.memory_space<vmem>>, vector<128x128xbf16>
    %cst_14 = arith.constant dense<0.000000e+00> : vector<16x128xf32>
    %25 = tpu.matmul %23, %24, %cst_14 {dimension_numbers = #tpu.dot_dimension_numbers<[1], [0], [0], [1], [0, 0, 1, 1], [], []>} : vector<16x128xbf16>, vector<128x128xbf16>, vector<16x128xf32> -> vector<16x128xf32>
    %26 = arith.addf %22, %25 : vector<16x128xf32>
    %c0_15 = arith.constant 0 : index
    %c0_16 = arith.constant 0 : index
    %27 = vector.load %arg8[%c0_15, %c0_16] : memref<16x128xf32, #tpu.memory_space<vmem>>, vector<16x128xf32>
    tpu.vector_store %arg8[%c0_15, %c0_16], %26 {strides = array<i32>} : memref<16x128xf32, #tpu.memory_space<vmem>>, vector<16x128xf32>,
    %c0_i32_17 = arith.constant 0 : i32
    %28 = arith.cmpi eq, %arg1, %c0_i32_17 : i32
    %29 = arith.extui %28 : i1 to i32
    %c0_i32_18 = arith.constant 0 : i32
    %30 = arith.cmpi ne, %29, %c0_i32_18 : i32
    scf.if %30 {
      %c0_19 = arith.constant 0 : index
      %c0_20 = arith.constant 0 : index
      %31 = vector.load %arg8[%c0_19, %c0_20] : memref<16x128xf32, #tpu.memory_space<vmem>>, vector<16x128xf32>
      %c0_21 = arith.constant 0 : index
      %c0_22 = arith.constant 0 : index
      %32 = vector.load %arg6[%c0_21, %c0_22] : memref<1x128xf32, #tpu.memory_space<vmem>>, vector<1x128xf32>
      %33 = vector.broadcast %32 : vector<1x128xf32> to vector<16x128xf32>
      %34 = arith.addf %31, %33 : vector<16x128xf32>
      %c0_23 = arith.constant 0 : index
      %c0_24 = arith.constant 0 : index
      %35 = vector.load %arg7[%c0_23, %c0_24] : memref<16x128xf32, #tpu.memory_space<vmem>>, vector<16x128xf32>
      tpu.vector_store %arg7[%c0_23, %c0_24], %34 {strides = array<i32>} : memref<16x128xf32, #tpu.memory_space<vmem>>, vector<16x128xf32>,
    } else {
    }
    return
  }
  func.func @transform_0(%arg0: i32, %arg1: i32) -> (i32, i32) {
    %c0_i32 = arith.constant 0 : i32
    %c0_i32_0 = arith.constant 0 : i32
    return %arg0, %c0_i32 : i32, i32
  }
  func.func @transform_1(%arg0: i32, %arg1: i32) -> (i32, i32) {
    %c0_i32 = arith.constant 0 : i32
    %c0_i32_0 = arith.constant 0 : i32
    return %c0_i32, %arg1 : i32, i32
  }
  func.func @transform_2(%arg0: i32, %arg1: i32) -> (i32, i32) {
    %c0_i32 = arith.constant 0 : i32
    %c0_i32_0 = arith.constant 0 : i32
    return %c0_i32, %arg1 : i32, i32
  }
  func.func @transform_3(%arg0: i32, %arg1: i32) -> (i32, i32) {
    %c0_i32 = arith.constant 0 : i32
    %c0_i32_0 = arith.constant 0 : i32
    return %arg1, %c0_i32 : i32, i32
  }
  func.func @transform_4(%arg0: i32, %arg1: i32) -> (i32, i32) {
    %c0_i32 = arith.constant 0 : i32
    %c0_i32_0 = arith.constant 0 : i32
    %c0_i32_1 = arith.constant 0 : i32
    return %c0_i32, %c0_i32_0 : i32, i32
  }
  func.func @transform_5(%arg0: i32, %arg1: i32) -> (i32, i32) {
    %c0_i32 = arith.constant 0 : i32
    %c0_i32_0 = arith.constant 0 : i32
    return %arg0, %c0_i32 : i32, i32
  }
}

</mosaic_0001>

<bundles_post_ra>
// kernel: tpu_custom_call.1
= control target key start
LH: loop header
LB: loop body
LE: loop exit
PB: predicated region body
PF: predicated region fallthrough
CT: control target
= control target key end

     0   :  { %10 = vsyncpa [#allocation4], 0  ;;  %s557_s0 = inlined_call_operand.hbm [shape: bf16[16,128], index: 0, kind: input, shape index: {}]   ;;  %s558_s1 = inlined_call_operand.hbm [shape: bf16[128,128], index: 1, kind: input, shape index: {}]   ;;  %s559_s2 = inlined_call_operand.vmem [shape: f32[1,128], index: 2, kind: input, shape index: {}]   ;;  %s560_s3 = inlined_call_operand.hbm [shape: bf16[128,128], index: 3, kind: input, shape index: {}]   ;;  %s561_s4 = inlined_call_operand.vmem [shape: f32[1,128], index: 4, kind: input, shape index: {}]   ;;  %s562_s5 = inlined_call_operand.hbm [shape: f32[16,128], index: 5, kind: output, shape index: {}]  }
   0x1   :  { %11 = vsyncpa [#allocation7], 0 }
   0x2   :  { %12 = vsyncpa [#allocation5], 0  ;;  %s30_s20 = sshll.u32 %s558_s1, 4  ;;  %s501_s21 = smov [#allocation6]   ;;  %s31_s20 = int_to_ptr.hbm [resolvable:$true] %s30_s20 }
   0x3   :  { %s32_s22 = sshll.u32 %s501_s21, 4  ;;  %s17_s25 = sshll.u32 %s557_s0, 4  ;;  %s33_s22 = int_to_ptr.vmem [resolvable:$true] %s32_s22  ;;  %s18_s25 = int_to_ptr.hbm [resolvable:$true] %s17_s25 }
   0x4   :  { %s502_s26 = smov 64   ;;  %s503_s27 = smov 4  }
   0x5   :  { %38 = dma.hbm_to_vmem [thread:$0]  %s31_s20, 1024, %s33_s22, [#allocation7], %s502_s26, %s502_s26, %s503_s27  }
   0x6   :  { %s504_s28 = smov [#allocation3]   ;;  %s45_s7 = sshll.u32 %s560_s3, 4  ;;  %s46_s7 = int_to_ptr.hbm [resolvable:$true] %s45_s7 }
   0x7   :  { %s19_s29 = sshll.u32 %s504_s28, 4  ;;  %s505_s1 = smov [#allocation8]   ;;  %s20_s29 = int_to_ptr.vmem [resolvable:$true] %s19_s29 }
   0x8   :  { %25 = dma.hbm_to_vmem [thread:$0]  %s18_s25, 128, %s20_s29, [#allocation4], %s502_s26, %s502_s26, %s503_s27  }
   0x9   :  { %s47_s8 = sshll.u32 %s505_s1, 4  ;;  %s48_s8 = int_to_ptr.vmem [resolvable:$true] %s47_s8 }
   0xa   :  { %53 = dma.hbm_to_vmem [thread:$0]  %s46_s7, 1024, %s48_s8, [#allocation7], %s502_s26, %s502_s26, %s503_s27  }
   0xb   :  { %495 = dma.done.wait [#allocation4], 128  }
   0xc   :  { %496 = vsyncadd [#allocation4], 4294967168 }
   0xd   :  { %497 = dma.done.wait [#allocation7], 2048  }
   0xe   :  { %498 = vsyncadd [#allocation7], 4294965248  ;;  %v376_v0 = vld [vmem:[#allocation6 + $0x38] sm:$0xff]  ;;  %v375_v1 = vld [vmem:[#allocation6 + $0x30] sm:$0xff]  ;;  %s506_s10 = smov [#allocation9]   ;;  %s286_s14 = sshll.u32 %s562_s5, 4  ;;  %s287_s14 = int_to_ptr.hbm [resolvable:$true] %s286_s14 }
   0xf   :  { %150 = vmatpush.bf16.msra.mxu0 %v376_v0  ;;  %v374_v2 = vld [vmem:[#allocation6 + $0x28] sm:$0xff]  ;;  %v373_v3 = vld [vmem:[#allocation6 + $0x20] sm:$0xff]  ;;  %v372_v4 = vld [vmem:[#allocation6 + $0x18] sm:$0xff]  ;;  %s284_s11 = sshll.u32 %s506_s10, 4  ;;  %s507_s15 = smov 128   ;;  %s285_s11 = int_to_ptr.vmem [resolvable:$true] %s284_s11 }
  0x10   :  { %v371_v5 = vld [vmem:[#allocation6 + $0x10] sm:$0xff]  ;;  %v370_v6 = vld [vmem:[#allocation6 + $0x8] sm:$0xff]  ;;  %v369_v7 = vld [vmem:[#allocation6] sm:$0xff]  ;;  %s508_s16 = smov 8  }
  0x11   :  { %v368_v8 = vld [vmem:[#allocation3] sm:$0xff]  ;;  %v383_v10 = vld [vmem:[#allocation8 + $0x30] sm:$0xff]  ;;  %v382_v11 = vld [vmem:[#allocation8 + $0x28] sm:$0xff] }
  0x12   :  { %v384_v9 = vld [vmem:[#allocation8 + $0x38] sm:$0xff]  ;;  %v381_v12 = vld [vmem:[#allocation8 + $0x20] sm:$0xff]  ;;  %v379_v14 = vld [vmem:[#allocation8 + $0x10] sm:$0xff] }
  0x13   :  { %151 = vmatpush.bf16.msra.mxu0 %v375_v1  ;;  %249 = vmatpush.bf16.msra.mxu1 %v384_v9  ;;  %v380_v13 = vld [vmem:[#allocation8 + $0x18] sm:$0xff]  ;;  %v378_v15 = vld [vmem:[#allocation8 + $0x8] sm:$0xff]  ;;  %v377_v17 = vld [vmem:[#allocation8] sm:$0xff] }
  0x14   :  { %v393_v16 = vld [vmem:[%s559_s2] ss:$0 sm:$0xff] }
  0x15   :  { %v394_v41 = vld [vmem:[%s561_s4] ss:$0 sm:$0xff] }
  0x17   :  { %152 = vmatpush.bf16.msra.mxu0 %v374_v2  ;;  %250 = vmatpush.bf16.msra.mxu1 %v383_v10 }
  0x1b   :  { %153 = vmatpush.bf16.msra.mxu0 %v373_v3  ;;  %251 = vmatpush.bf16.msra.mxu1 %v382_v11 }
  0x1f   :  { %154 = vmatpush.bf16.msra.mxu0 %v372_v4  ;;  %252 = vmatpush.bf16.msra.mxu1 %v381_v12 }
  0x23   :  { %155 = vmatpush.bf16.msra.mxu0 %v371_v5  ;;  %253 = vmatpush.bf16.msra.mxu1 %v380_v13 }
  0x27   :  { %156 = vmatpush.bf16.msra.mxu0 %v370_v6  ;;  %254 = vmatpush.bf16.msra.mxu1 %v379_v14 }
  0x2b   :  { %157 = vmatpush.bf16.msra.mxu0 %v369_v7  ;;  %255 = vmatpush.bf16.msra.mxu1 %v378_v15 }
  0x2e   :  { %158 = vmatmul.bf16.vlgmr.msra.gmra.mxu0 %v368_v8 }
  0x2f   :  { %256 = vmatpush.bf16.msra.mxu1 %v377_v17 }
  0xab   :  { %v159_v18 = vpop.f32.mrf.mxu0 }
  0xac   :  { %v160_v19 = vadd.f32 %v393_v16, %v159_v18 }
  0xae   :  { %v164_v20 = vmul.f32 %v160_v19, %v160_v19 }
  0xb0   :  { %v166_v21 = vmul.f32 %v164_v20, %v160_v19 }
  0xb2   :  { %v168_v22 = vmul.f32 0.044715, %v166_v21 }
  0xb3   :  { %v161_v23 = vpop.f32.mrf.mxu0 }
  0xb4   :  { %v170_v24 = vadd.f32 %v168_v22, %v160_v19  ;;  %v162_v25 = vadd.f32 %v393_v16, %v161_v23 }
  0xb6   :  { %v165_v26 = vmul.f32 %v162_v25, %v162_v25  ;;  %v172_v27 = vmul.f32 0.7978846, %v170_v24 }
  0xb8   :  { %v167_v28 = vmul.f32 %v165_v26, %v162_v25  ;;  %395 = vtanh.f32 %v172_v27 }
  0xba   :  { %v169_v29 = vmul.f32 0.044715, %v167_v28 }
  0xbc   :  { %v171_v30 = vadd.f32 %v169_v29, %v162_v25 }
  0xbe   :  { %v173_v31 = vmul.f32 0.7978846, %v171_v30  ;;  %v396_v32 = vpop.eup %395 }
  0xbf   :  { %v176_v33 = vadd.f32 1.0, %v396_v32 }
  0xc0   :  { %397 = vtanh.f32 %v173_v31 }
  0xc1   :  { %v178_v36 = vmul.f32 0.5, %v176_v33 }
  0xc3   :  { %v180_v38 = vmul.f32 %v178_v36, %v160_v19 }
  0xc6   :  { %v398_v34 = vpop.eup %397 }
  0xc7   :  { %v177_v35 = vadd.f32 1.0, %v398_v34 }
  0xc9   :  { %v179_v37 = vmul.f32 0.5, %v177_v35 }
  0xcb   :  { %v181_v39 = vmul.f32 %v179_v37, %v162_v25 }
  0xcd   :  { %v184_v40 = vpack.c.bf16 %v181_v39, %v180_v38 }
  0xcf   :  { %257 = vmatmul.bf16.vlgmr.msra.gmra.mxu1 %v184_v40 }
 0x14c   :  { %v258_v42 = vpop.f32.mrf.mxu1 }
 0x14d   :  { %v276_v43 = vadd.f32 %v394_v41, %v258_v42 }
 0x14f   :  { %278 = vst [vmem:[#allocation9] sm:$0xff] %v276_v43 }
 0x154   :  { %v260_v44 = vpop.f32.mrf.mxu1 }
 0x155   :  { %v277_v45 = vadd.f32 %v394_v41, %v260_v44 }
 0x157   :  { %279 = vst [vmem:[#allocation9 + $0x8] sm:$0xff] %v277_v45 }
 0x158   :  { %292 = dma.vmem_to_hbm [thread:$0]  %s285_s11, 256, %s287_s14, [#allocation5], %s507_s15, %s507_s15, %s508_s16  }
 0x159   :  { %499 = dma.done.wait [#allocation5], 256  }
 0x15a   :  { %500 = vsyncadd [#allocation5], 4294967040 }
 0x15b   :  { %297 = vsyncpa [#allocation4], 1 }
 0x15c   :  { %298 = vsyncpa [#allocation7], 1 }
 0x15d   :  { %299 = vsyncpa [#allocation5], 1 }

</bundles_post_ra>
